<compile_context>
chip_gen: v6e
topology: v6e:2x2x1
jax: 0.10.0
libtpu: 0.0.40
codegen_flags: <defaults>
</compile_context>

<pallas_src>
import functools

import jax
import jax.numpy as jnp
from jax.experimental import pallas as pl
from jax.experimental.pallas import tpu as pltpu


def _round_up(x, m):
    return ((x + m - 1) // m) * m


# --------------------------------------------------------------------------
# Kernel
# --------------------------------------------------------------------------
def _proj_logsoftmax_kernel(x_ref, w_ref, b_ref, o_ref, m_ref, l_ref,
                            *, vocab_tile):
    # x_ref: (RT, D)   w_ref: (D, VT)   b_ref: (1, VT) f32
    # o_ref: (RT, V_pad)  -- resident across the vocab axis
    # m_ref/l_ref: (RT, 1) f32 scratch (running max / running sum of exp)
    j = pl.program_id(1)
    n_vt = pl.num_programs(1)

    @pl.when(j == 0)
    def _init():
        m_ref[...] = jnp.full(m_ref.shape, -jnp.inf, dtype=jnp.float32)
        l_ref[...] = jnp.zeros(l_ref.shape, dtype=jnp.float32)

    # MXU matmul with f32 accumulation; bias is pre-cast to f32 in the wrapper.
    logits = jnp.dot(x_ref[...], w_ref[...],
                     preferred_element_type=jnp.float32)
    logits = logits + b_ref[...]

    # Online log-sum-exp update (VPU/XLU/EUP).
    m_prev = m_ref[...]
    m_new = jnp.maximum(m_prev, jnp.max(logits, axis=-1, keepdims=True))
    l_ref[...] = (l_ref[...] * jnp.exp(m_prev - m_new)
                  + jnp.sum(jnp.exp(logits - m_new), axis=-1, keepdims=True))
    m_ref[...] = m_new

    # Stash raw logits into the resident output block (lane-dense store when
    # vocab_tile % 128 == 0).  Minor precision note: for bf16 outputs the raw
    # logits round-trip through bf16 before the final subtraction.
    start = j * vocab_tile
    if vocab_tile % 128 == 0:
        start = pl.multiple_of(start, 128)
    o_ref[:, pl.ds(start, vocab_tile)] = logits.astype(o_ref.dtype)

    @pl.when(j == n_vt - 1)
    def _finalize():
        lse = m_ref[...] + jnp.log(l_ref[...])
        o_ref[...] = (o_ref[...].astype(jnp.float32) - lse).astype(o_ref.dtype)


# --------------------------------------------------------------------------
# Sizing helpers
# --------------------------------------------------------------------------
def _vmem_limits():
    """Generation-aware (limit, tile budget) in bytes."""
    cap = 64 * 1024 * 1024          # conservative default = v7x per-TC VMEM
    try:
        info = pltpu.get_tpu_info()
        cap_attr = getattr(info, "vmem_capacity_bytes", None)
        if cap_attr:
            cap = int(cap_attr)
    except Exception:
        pass
    cap = max(32 * 1024 * 1024, min(cap, 128 * 1024 * 1024))
    limit = min(cap - 8 * 1024 * 1024, (cap * 7) // 8)   # 56 MiB v7x, 112 MiB v5e/v6e
    budget = max(limit - 12 * 1024 * 1024, 16 * 1024 * 1024)
    return int(limit), int(budget)


def _align_row_tile(rt, rows):
    """Round the row tile to an MXU-friendly size, never below 8."""
    rows8 = _round_up(max(rows, 1), 8)
    rt = max(8, min(int(rt), 1024, rows8))
    for a in (256, 128, 64, 32, 16, 8):
        if rt >= a:
            rt = (rt // a) * a
            break
    return max(rt, 8)


def _select_tiles(rows, input_dim, vocab, x_bytes, w_bytes, out_bytes, budget):
    """Pick (row_tile, vocab_tile, vocab_pad) that fit the VMEM budget."""
    # ---- resident-weight path: whole (D, V) weight stays in VMEM ----------
    # Pallas allocates 2 buffers per input by default (even for constant
    # index maps), so count the weight and bias twice.
    # TODO(synk): single-buffer the resident weight/bias with
    # pipeline_mode=pl.Buffered(1) once validated on all target generations.
    resident_fixed = 2 * input_dim * vocab * w_bytes + 2 * vocab * 4
    per_row_res = (2 * input_dim * x_bytes      # double-buffered x tile
                   + 2 * vocab * out_bytes      # double-buffered resident out
                   + 3 * vocab * 4              # f32 logits/exp intermediates
                   + 8)                         # LSE scratch
    if resident_fixed <= budget // 2:
        rt = _align_row_tile((budget - resident_fixed) // per_row_res, rows)
        if rt >= min(128, _round_up(rows, 8)):
            if rt >= rows and rows >= 256:      # keep both v7x TCs busy
                rt = _align_row_tile((rows + 1) // 2, rows)
            return rt, vocab, vocab

    # ---- vocab-tiled path: stream the weight in (D, vocab_tile) slices ----
    vt = (budget // 3) // max(2 * input_dim * w_bytes, 1)
    vt = max(128, (vt // 128) * 128)
    vt = min(vt, _round_up(vocab, 128))
    vocab_pad = _round_up(vocab, vt)
    fixed = 2 * input_dim * vt * w_bytes + 2 * vt * 4
    per_row = (2 * input_dim * x_bytes
               + 2 * vocab_pad * out_bytes
               + 3 * vt * 4
               + 8)
    rt = _align_row_tile(max((budget - fixed) // per_row, 8), rows)
    if rt >= rows and rows >= 256:
        rt = _align_row_tile((rows + 1) // 2, rows)
    return rt, vt, vocab_pad


# --------------------------------------------------------------------------
# Wrappers
# --------------------------------------------------------------------------
def prepare_projection_params(weight, bias, dtype=None):
    """One-time parameter prep (hoisted out of the per-call hot path):
    transpose the PyTorch (V, D) weight to (D, V) and pre-cast bias to f32."""
    dtype = dtype or weight.dtype
    w_t = jnp.asarray(weight).T.astype(dtype)
    b2d = jnp.asarray(bias).astype(jnp.float32).reshape(1, -1)
    return w_t, b2d


def projection_log_softmax(x, w_t, b2d, *, row_tile=None, vocab_tile=None):
    """log_softmax(x @ w_t + b, axis=-1).  w_t: (D, V) pre-transposed weight,
    b2d: (1, V) f32 bias from prepare_projection_params."""
    orig_shape = x.shape
    input_dim = orig_shape[-1]
    vocab = w_t.shape[1]
    assert w_t.shape[0] == input_dim and b2d.shape == (1, vocab)

    x2d = x.reshape(-1, input_dim)
    rows = x2d.shape[0]
    out_dtype = x.dtype

    vmem_limit, budget = _vmem_limits()
    x_bytes = jnp.dtype(x.dtype).itemsize
    w_bytes = jnp.dtype(w_t.dtype).itemsize
    o_bytes = jnp.dtype(out_dtype).itemsize

    auto_rt, auto_vt, _ = _select_tiles(rows, input_dim, vocab,
                                        x_bytes, w_bytes, o_bytes, budget)
    row_tile = int(row_tile or auto_rt)
    vocab_tile = int(vocab_tile or auto_vt)
    vocab_pad = _round_up(vocab, vocab_tile)

    w_k, b_k = w_t, b2d
    if vocab_pad != vocab:
        # Pad the vocab axis so every weight/output tile is full.  Padded
        # columns get bias = -inf, so they contribute nothing to the LSE.
        w_k = jnp.pad(w_t, ((0, 0), (0, vocab_pad - vocab)))
        b_k = jnp.pad(b2d, ((0, 0), (0, vocab_pad - vocab)),
                      constant_values=-jnp.inf)

    n_vt = vocab_pad // vocab_tile
    grid = (pl.cdiv(rows, row_tile), n_vt)

    kernel = functools.partial(_proj_logsoftmax_kernel, vocab_tile=vocab_tile)

    out = pl.pallas_call(
        kernel,
        out_shape=jax.ShapeDtypeStruct((rows, vocab_pad), out_dtype),
        grid=grid,
        in_specs=[
            pl.BlockSpec((row_tile, input_dim), lambda i, j: (i, 0)),    # x
            pl.BlockSpec((input_dim, vocab_tile), lambda i, j: (0, j)),  # W^T
            pl.BlockSpec((1, vocab_tile), lambda i, j: (0, j)),          # bias
        ],
        out_specs=pl.BlockSpec((row_tile, vocab_pad), lambda i, j: (i, 0)),
        scratch_shapes=[
            pltpu.VMEM((row_tile, 1), jnp.float32),   # running max m
            pltpu.VMEM((row_tile, 1), jnp.float32),   # running sum l
        ],
        compiler_params=pltpu.CompilerParams(
            dimension_semantics=("parallel", "arbitrary"),
            vmem_limit_bytes=int(vmem_limit),
        ),
    )(x2d, w_k, b_k)

    if vocab_pad != vocab:
        out = out[:, :vocab]
    return out.reshape(orig_shape[:-1] + (vocab,))


def projection_log_softmax_ref(x, weight, bias):
    logits = jnp.einsum("...d,vd->...v", x.astype(jnp.float32),
                        weight.astype(jnp.float32)) + bias.astype(jnp.float32)
    return jax.nn.log_softmax(logits, axis=-1).astype(x.dtype)


# --------------------------------------------------------------------------
# Demo / correctness check
# --------------------------------------------------------------------------
if __name__ == "__main__":
    key = jax.random.PRNGKey(0)

    def make_params(k, vocab, input_dim):
        kw, kb = jax.random.split(k)
        bound = 1.0 / (input_dim ** 0.5)        # nn.Linear default init
        w = jax.random.uniform(kw, (vocab, input_dim), jnp.float32,
                               minval=-bound, maxval=bound)
        b = jax.random.uniform(kb, (vocab,), jnp.float32,
                               minval=-bound, maxval=bound)
        return w, b

    # --- main check: resident-weight path (module-sized small shapes) ------
    batch, seq, input_dim, vocab = 2, 8, 32, 128
    kx, kp = jax.random.split(key)
    x = jax.random.normal(kx, (batch, seq, input_dim), dtype=jnp.float32)
    weight, bias = make_params(kp, vocab, input_dim)

    w_t, b2d = prepare_projection_params(weight, bias)   # hoisted prep
    out = projection_log_softmax(x, w_t, b2d)
    out = jax.block_until_ready(out)
    ref = projection_log_softmax_ref(x, weight, bias)
    assert out.shape == (batch, seq, vocab)
    assert jnp.allclose(out, ref, atol=1e-4, rtol=1e-4), (
        f"max err = {jnp.max(jnp.abs(out - ref))}")

    # --- extra check: vocab-tiled online-LSE path (forced small tiles) -----
    vocab2 = 384
    kx2, kp2 = jax.random.split(kp)
    x2 = jax.random.normal(kx2, (batch, seq, input_dim), dtype=jnp.float32)
    w2, b2 = make_params(kp2, vocab2, input_dim)
    w2_t, b2_2d = prepare_projection_params(w2, b2)
    out2 = jax.block_until_ready(
        projection_log_softmax(x2, w2_t, b2_2d, row_tile=8, vocab_tile=128))
    ref2 = projection_log_softmax_ref(x2, w2, b2)
    assert jnp.allclose(out2, ref2, atol=1e-4, rtol=1e-4), (
        f"max err (tiled) = {jnp.max(jnp.abs(out2 - ref2))}")

    # --- extra check: ragged vocab (padding with -inf bias), tiled path ----
    vocab3 = 200
    kx3, kp3 = jax.random.split(kp2)
    x3 = jax.random.normal(kx3, (batch, seq, input_dim), dtype=jnp.float32)
    w3, b3 = make_params(kp3, vocab3, input_dim)
    w3_t, b3_2d = prepare_projection_params(w3, b3)
    out3 = jax.block_until_ready(
        projection_log_softmax(x3, w3_t, b3_2d, row_tile=8, vocab_tile=128))
    ref3 = projection_log_softmax_ref(x3, w3, b3)
    assert out3.shape == (batch, seq, vocab3)
    assert jnp.allclose(out3, ref3, atol=1e-4, rtol=1e-4), (
        f"max err (ragged) = {jnp.max(jnp.abs(out3 - ref3))}")

    print("KERNEL_OK")
</pallas_src>

<mosaic_0001>
module attributes {stable_mosaic.version = 11 : i64} {
  func.func @_proj_logsoftmax_kernel(%arg0: i32, %arg1: i32, %arg2: memref<16x32xf32, #tpu.memory_space<vmem>>, %arg3: memref<32x128xf32, #tpu.memory_space<vmem>>, %arg4: memref<1x128xf32, #tpu.memory_space<vmem>>, %arg5: memref<16x128xf32, #tpu.memory_space<vmem>>, %arg6: memref<16x1xf32, #tpu.memory_space<vmem>>, %arg7: memref<16x1xf32, #tpu.memory_space<vmem>>) attributes {dimension_semantics = [#tpu.dimension_semantics<parallel>, #tpu.dimension_semantics<arbitrary>], iteration_bounds = array<i64: 1, 1>, scalar_prefetch = 0 : i64, scratch_operands = 2 : i64, tpu.core_type = #tpu.core_type<tc>, window_params = [{transform_indices = @transform_0, window_bounds = array<i64: 16, 32>}, {transform_indices = @transform_1, window_bounds = array<i64: 32, 128>}, {transform_indices = @transform_2, window_bounds = array<i64: 1, 128>}, {transform_indices = @transform_3, window_bounds = array<i64: 16, 128>}]} {
    %c0_i32 = arith.constant 0 : i32
    %0 = arith.cmpi eq, %arg1, %c0_i32 : i32
    %1 = arith.extui %0 : i1 to i32
    %c0_i32_0 = arith.constant 0 : i32
    %2 = arith.cmpi ne, %1, %c0_i32_0 : i32
    scf.if %2 {
      %cst_19 = arith.constant 0xFF800000 : f32
      %32 = vector.broadcast %cst_19 : f32 to vector<16x1xf32>
      %c0_20 = arith.constant 0 : index
      %c0_21 = arith.constant 0 : index
      %33 = vector.load %arg6[%c0_20, %c0_21] : memref<16x1xf32, #tpu.memory_space<vmem>>, vector<16x1xf32>
      tpu.vector_store %arg6[%c0_20, %c0_21], %32 {strides = array<i32>} : memref<16x1xf32, #tpu.memory_space<vmem>>, vector<16x1xf32>,
      %cst_22 = arith.constant 0.000000e+00 : f32
      %34 = vector.broadcast %cst_22 : f32 to vector<16x1xf32>
      %c0_23 = arith.constant 0 : index
      %c0_24 = arith.constant 0 : index
      %35 = vector.load %arg7[%c0_23, %c0_24] : memref<16x1xf32, #tpu.memory_space<vmem>>, vector<16x1xf32>
      tpu.vector_store %arg7[%c0_23, %c0_24], %34 {strides = array<i32>} : memref<16x1xf32, #tpu.memory_space<vmem>>, vector<16x1xf32>,
    } else {
    }
    %c0 = arith.constant 0 : index
    %c0_1 = arith.constant 0 : index
    %3 = vector.load %arg2[%c0, %c0_1] : memref<16x32xf32, #tpu.memory_space<vmem>>, vector<16x32xf32>
    %c0_2 = arith.constant 0 : index
    %c0_3 = arith.constant 0 : index
    %4 = vector.load %arg3[%c0_2, %c0_3] : memref<32x128xf32, #tpu.memory_space<vmem>>, vector<32x128xf32>
    %cst = arith.constant dense<0.000000e+00> : vector<16x128xf32>
    %5 = tpu.matmul %3, %4, %cst {dimension_numbers = #tpu.dot_dimension_numbers<[1], [0], [0], [1], [0, 0, 1, 1], [], []>} : vector<16x32xf32>, vector<32x128xf32>, vector<16x128xf32> -> vector<16x128xf32>
    %c0_4 = arith.constant 0 : index
    %c0_5 = arith.constant 0 : index
    %6 = vector.load %arg4[%c0_4, %c0_5] : memref<1x128xf32, #tpu.memory_space<vmem>>, vector<1x128xf32>
    %7 = vector.broadcast %6 : vector<1x128xf32> to vector<16x128xf32>
    %8 = arith.addf %5, %7 : vector<16x128xf32>
    %c0_6 = arith.constant 0 : index
    %c0_7 = arith.constant 0 : index
    %9 = vector.load %arg6[%c0_6, %c0_7] : memref<16x1xf32, #tpu.memory_space<vmem>>, vector<16x1xf32>
    %cst_8 = arith.constant dense<0xFF800000> : vector<16xf32>
    %10 = vector.multi_reduction <maximumf>, %8, %cst_8 [1] : vector<16x128xf32> to vector<16xf32>
    %11 = vector.shape_cast %10 : vector<16xf32> to vector<16x1xf32>
    %12 = arith.maximumf %9, %11 : vector<16x1xf32>
    %c0_9 = arith.constant 0 : index
    %c0_10 = arith.constant 0 : index
    %13 = vector.load %arg7[%c0_9, %c0_10] : memref<16x1xf32, #tpu.memory_space<vmem>>, vector<16x1xf32>
    %14 = arith.subf %9, %12 : vector<16x1xf32>
    %15 = math.exp %14 : vector<16x1xf32>
    %16 = arith.mulf %13, %15 : vector<16x1xf32>
    %17 = vector.broadcast %12 : vector<16x1xf32> to vector<16x128xf32>
    %18 = arith.subf %8, %17 : vector<16x128xf32>
    %19 = math.exp %18 : vector<16x128xf32>
    %cst_11 = arith.constant dense<0.000000e+00> : vector<16xf32>
    %20 = vector.multi_reduction <add>, %19, %cst_11 [1] : vector<16x128xf32> to vector<16xf32>
    %21 = vector.shape_cast %20 : vector<16xf32> to vector<16x1xf32>
    %22 = arith.addf %16, %21 : vector<16x1xf32>
    %c0_12 = arith.constant 0 : index
    %c0_13 = arith.constant 0 : index
    %23 = vector.load %arg7[%c0_12, %c0_13] : memref<16x1xf32, #tpu.memory_space<vmem>>, vector<16x1xf32>
    tpu.vector_store %arg7[%c0_12, %c0_13], %22 {strides = array<i32>} : memref<16x1xf32, #tpu.memory_space<vmem>>, vector<16x1xf32>,
    %c0_14 = arith.constant 0 : index
    %c0_15 = arith.constant 0 : index
    %24 = vector.load %arg6[%c0_14, %c0_15] : memref<16x1xf32, #tpu.memory_space<vmem>>, vector<16x1xf32>
    tpu.vector_store %arg6[%c0_14, %c0_15], %12 {strides = array<i32>} : memref<16x1xf32, #tpu.memory_space<vmem>>, vector<16x1xf32>,
    %c128_i32 = arith.constant 128 : i32
    %25 = arith.muli %arg1, %c128_i32 : i32
    %26 = tpu.assume_multiple %25, 128 : i32
    %c0_16 = arith.constant 0 : index
    %27 = arith.index_cast %26 : i32 to index
    %28 = vector.load %arg5[%c0_16, %27] : memref<16x128xf32, #tpu.memory_space<vmem>>, vector<16x128xf32>
    tpu.vector_store %arg5[%c0_16, %27], %8 {strides = array<i32>} : memref<16x128xf32, #tpu.memory_space<vmem>>, vector<16x128xf32>,
    %c0_i32_17 = arith.constant 0 : i32
    %29 = arith.cmpi eq, %arg1, %c0_i32_17 : i32
    %30 = arith.extui %29 : i1 to i32
    %c0_i32_18 = arith.constant 0 : i32
    %31 = arith.cmpi ne, %30, %c0_i32_18 : i32
    scf.if %31 {
      %c0_19 = arith.constant 0 : index
      %c0_20 = arith.constant 0 : index
      %32 = vector.load %arg6[%c0_19, %c0_20] : memref<16x1xf32, #tpu.memory_space<vmem>>, vector<16x1xf32>
      %c0_21 = arith.constant 0 : index
      %c0_22 = arith.constant 0 : index
      %33 = vector.load %arg7[%c0_21, %c0_22] : memref<16x1xf32, #tpu.memory_space<vmem>>, vector<16x1xf32>
      %34 = math.log %33 : vector<16x1xf32>
      %35 = arith.addf %32, %34 : vector<16x1xf32>
      %c0_23 = arith.constant 0 : index
      %c0_24 = arith.constant 0 : index
      %36 = vector.load %arg5[%c0_23, %c0_24] : memref<16x128xf32, #tpu.memory_space<vmem>>, vector<16x128xf32>
      %37 = vector.broadcast %35 : vector<16x1xf32> to vector<16x128xf32>
      %38 = arith.subf %36, %37 : vector<16x128xf32>
      %c0_25 = arith.constant 0 : index
      %c0_26 = arith.constant 0 : index
      %39 = vector.load %arg5[%c0_25, %c0_26] : memref<16x128xf32, #tpu.memory_space<vmem>>, vector<16x128xf32>
      tpu.vector_store %arg5[%c0_25, %c0_26], %38 {strides = array<i32>} : memref<16x128xf32, #tpu.memory_space<vmem>>, vector<16x128xf32>,
    } else {
    }
    return
  }
  func.func @transform_0(%arg0: i32, %arg1: i32) -> (i32, i32) {
    %c0_i32 = arith.constant 0 : i32
    %c0_i32_0 = arith.constant 0 : i32
    return %arg0, %c0_i32 : i32, i32
  }
  func.func @transform_1(%arg0: i32, %arg1: i32) -> (i32, i32) {
    %c0_i32 = arith.constant 0 : i32
    %c0_i32_0 = arith.constant 0 : i32
    return %c0_i32, %arg1 : i32, i32
  }
  func.func @transform_2(%arg0: i32, %arg1: i32) -> (i32, i32) {
    %c0_i32 = arith.constant 0 : i32
    %c0_i32_0 = arith.constant 0 : i32
    return %c0_i32, %arg1 : i32, i32
  }
  func.func @transform_3(%arg0: i32, %arg1: i32) -> (i32, i32) {
    %c0_i32 = arith.constant 0 : i32
    %c0_i32_0 = arith.constant 0 : i32
    return %arg0, %c0_i32 : i32, i32
  }
}

</mosaic_0001>

<bundles_post_ra>
// kernel: tpu_custom_call.1
= control target key start
LH: loop header
LB: loop body
LE: loop exit
PB: predicated region body
PF: predicated region fallthrough
CT: control target
= control target key end

     0   :  { %8 = vsyncpa [#allocation5], 0  ;;  %s423_s0 = inlined_call_operand.hbm [shape: f32[16,32], index: 0, kind: input, shape index: {}]   ;;  %s424_s1 = inlined_call_operand.hbm [shape: f32[32,128], index: 1, kind: input, shape index: {}]   ;;  %s425_s2 = inlined_call_operand.vmem [shape: f32[1,128], index: 2, kind: input, shape index: {}]   ;;  %s426_s3 = inlined_call_operand.hbm [shape: f32[16,128], index: 3, kind: output, shape index: {}]  }
   0x1   :  { %9 = vsyncpa [#allocation8], 0 }
   0x2   :  { %10 = vsyncpa [#allocation6], 0  ;;  %s354_s12 = smov [#allocation4]  }
   0x3   :  { %s16_s13 = sshll.u32 %s354_s12, 4  ;;  %s17_s13 = int_to_ptr.vmem [resolvable:$true] %s16_s13 }
   0x4   :  { %s296_s14 = scalar_lea.vmem %s17_s13, 256  ;;  %p301_p1 = scmp.lt.s32.totalorder %s17_s13, %s17_s13 }
   0x5   :  { %p297_p0 = scmp.ne.s32.totalorder %s17_s13, %s296_s14  ;;  %p302_p2 = scmp.lt.s32.totalorder %s296_s14, %s296_s14 }
   0x7   :  { %p303_p3 = por %p302_p2, %p301_p1 }
   0x9   :  { %p304_p4 = pnand %p303_p3, %p297_p0 }
   0xb   :  { %307 = shalt.err (!%p304_p4)
}
   0xc   :  { %s355_s15 = smov 128   ;;  %s356_s16 = smov 8  }
   0xd   :  { %22 = dma.hbm_to_vmem [thread:$0]  %s423_s0, 256, %s17_s13, [#allocation5], %s355_s15, %s355_s15, %s356_s16  }
   0xe   :  { %s357_s19 = smov [#allocation7]  }
   0xf   :  { %s28_s20 = sshll.u32 %s357_s19, 4  ;;  %s29_s20 = int_to_ptr.vmem [resolvable:$true] %s28_s20 }
  0x10   :  { %s316_s21 = scalar_lea.vmem %s29_s20, 512  ;;  %p321_p6 = scmp.lt.s32.totalorder %s29_s20, %s29_s20 }
  0x11   :  { %p317_p5 = scmp.ne.s32.totalorder %s29_s20, %s316_s21  ;;  %p322_p7 = scmp.lt.s32.totalorder %s316_s21, %s316_s21 }
  0x13   :  { %p323_p8 = por %p322_p7, %p321_p6 }
  0x15   :  { %p324_p9 = pnand %p323_p8, %p317_p5 }
  0x17   :  { %327 = shalt.err (!%p324_p9)
}
  0x18   :  { %34 = dma.hbm_to_vmem [thread:$0]  %s424_s1, 512, %s29_s20, [#allocation8], %s355_s15, %s355_s15, %s356_s16  }
  0x19   :  { %348 = dma.done.wait [#allocation5], 256  }
  0x1a   :  { %349 = vsyncadd [#allocation5], 4294967040 }
  0x1b   :  { %350 = dma.done.wait [#allocation8], 512  }
  0x1c   :  { %351 = vsyncadd [#allocation8], 4294966784  ;;  %vm65_vm0 = vcmask 261120   ;;  %v57_v0 = vld [vmem:[#allocation7 + $0x18] sm:$0xff]  ;;  %v56_v1 = vld [vmem:[#allocation7 + $0x10] sm:$0xff]  ;;  %vm47_vm1 = vcmask 7168  }
  0x1d   :  { %255 = vmatprep.subr.mxu0 %v57_v0  ;;  %v52_v2 = vld [vmem:[#allocation4] sm:$0xff]  ;;  %v55_v3 = vld [vmem:[#allocation7 + $0x8] sm:$0xff]  ;;  %v54_v4 = vld [vmem:[#allocation7] sm:$0xff]  ;;  %v358_v6 = vmov -inf   ;;  %v359_v12 = vmov 0   ;;  %v360_v13 = vmov 0.0  }
  0x1e   :  { %256 = vmatpush3.msra.mxu0 %v57_v0  ;;  %263 = vmatprep.mubr.msk.f32.mxu0 %vm65_vm0, %v52_v2  ;;  %v53_v5 = vld [vmem:[#allocation4 + $0x8] sm:$0xff]  ;;  %48 = vst.msk [vmem:[#allocation2] sm:$0xff] %vm47_vm1, %v358_v6  ;;  %49 = vst.msk [vmem:[#allocation2 + $0x8] sm:$0xff] %vm47_vm1, %v358_v6  ;;  %v246_v8 = vld [vmem:[%s425_s2] ss:$0 sm:$0xff]  ;;  %s361_s2 = smov [#allocation9]  }
  0x1f   :  { %257 = vmatprep.subr.mxu0 %v56_v1  ;;  %274 = vset.pattern.permute.xlu1 %v359_v12  ;;  %50 = vst.msk [vmem:[#allocation3] sm:$0xff] %vm47_vm1, %v360_v13  ;;  %51 = vst.msk [vmem:[#allocation3 + $0x8] sm:$0xff] %vm47_vm1, %v360_v13  ;;  %s232_s24 = sshll.u32 %s361_s2, 4  ;;  %s233_s24 = int_to_ptr.vmem [resolvable:$true] %s232_s24 }
  0x20   :  { %258 = vmatpush3.msra.mxu0 %v56_v1  ;;  %275 = vset.pattern.permute.xlu0 %v359_v12  ;;  %s328_s25 = scalar_lea.vmem %s233_s24, 256  ;;  %p333_p11 = scmp.lt.s32.totalorder %s233_s24, %s233_s24 }
  0x21   :  { %259 = vmatprep.subr.mxu0 %v55_v3  ;;  %p329_p10 = scmp.ne.s32.totalorder %s233_s24, %s328_s25  ;;  %p334_p12 = scmp.lt.s32.totalorder %s328_s25, %s328_s25 }
  0x22   :  { %260 = vmatpush3.msra.mxu0 %v55_v3 }
  0x23   :  { %261 = vmatprep.subr.mxu0 %v54_v4  ;;  %p335_p13 = por %p334_p12, %p333_p11 }
  0x24   :  { %262 = vmatpush3.msra.mxu0 %v54_v4 }
  0x25   :  { %264 = vmatmul.mubr.msk.f32.vlgmr.msra.gmra.mxu0 %vm65_vm0, %v53_v5  ;;  %v147_v14 = vld [vmem:[#allocation2] sm:$0xff]  ;;  %v148_v17 = vld [vmem:[#allocation2 + $0x8] sm:$0xff]  ;;  %p336_p0 = pnand %p335_p13, %p329_p10 }
  0x26   :  { %v155_v33 = vld [vmem:[#allocation3] sm:$0xff]  ;;  %v156_v37 = vld [vmem:[#allocation3 + $0x8] sm:$0xff] }
  0xe5   :  { %v265_v7 = vpop.f32.mrf.mxu0 }
  0xe6   :  { %v404_v11 = vadd.f32 %v265_v7, %v246_v8 }
  0xe7   :  { %v138_v9 = vpop.f32.mrf.mxu0 }
  0xe8   :  { %v401_v10 = vadd.f32 %v246_v8, %v138_v9 }
  0xea   :  { %149 = vmax.xlane.f32.xlu0 %v401_v10 }
  0xee   :  { %151 = vmax.xlane.f32.xlu0 %v404_v11 }
 0x173   :  { %v150_v15 = vpop.xlane.xlu0 %149 }
 0x174   :  { %v153_v16 = vmax.f32 %v147_v14, %v150_v15 }
 0x176   :  { %v157_v18 = vsub.f32 %v147_v14, %v153_v16  ;;  %190 = vst.msk [vmem:[#allocation2] sm:$0xff] %vm47_vm1, %v153_v16  ;;  %167 = vperm.xlu1 %274, %v153_v16  }
 0x177   :  { %v152_v19 = vpop.xlane.xlu0 %151 }
 0x178   :  { %v154_v20 = vmax.f32 %v148_v17, %v152_v19  ;;  %v159_v30 = vmul.f32 1.442695, %v157_v18 }
 0x17a   :  { %v158_v21 = vsub.f32 %v148_v17, %v154_v20  ;;  %191 = vst.msk [vmem:[#allocation2 + $0x8] sm:$0xff] %vm47_vm1, %v154_v20  ;;  %172 = vperm.xlu1 %274, %v154_v20  }
 0x17c   :  { %v161_v31 = vmul.f32 1.442695, %v158_v21 }
 0x17d   :  { %v201_v46 = vld [vmem:[#allocation2] sm:$0xff] }
 0x181   :  { %v202_v50 = vld [vmem:[#allocation2 + $0x8] sm:$0xff] }
 0x1f1   :  { %v168_v22 = vpop.permute.xlu1 %167 }
 0x1f2   :  { %v175_v23 = vsub.f32 %v401_v10, %v168_v22 }
 0x1f4   :  { %v177_v24 = vmul.f32 1.442695, %v175_v23 }
 0x1f5   :  { %v173_v25 = vpop.permute.xlu1 %172 }
 0x1f6   :  { %276 = vpow2.f32 %v177_v24  ;;  %v176_v26 = vsub.f32 %v404_v11, %v173_v25 }
 0x1f8   :  { %v179_v27 = vmul.f32 1.442695, %v176_v26 }
 0x1fa   :  { %278 = vpow2.f32 %v179_v27 }
 0x1fb   :  { %280 = vpow2.f32 %v159_v30 }
 0x1fc   :  { %282 = vpow2.f32 %v161_v31 }
 0x203   :  { %v277_v28 = vpop.eup %276 }
 0x204   :  { %181 = vadd.xlane.f32.xlu0 %v277_v28 }
 0x207   :  { %v279_v29 = vpop.eup %278 }
 0x208   :  { %183 = vadd.xlane.f32.xlu1 %v279_v29  ;;  %v281_v32 = vpop.eup %280 }
 0x209   :  { %v163_v34 = vmul.f32 %v281_v32, %v155_v33  ;;  %v283_v35 = vpop.eup %282 }
 0x20a   :  { %v164_v39 = vmul.f32 %v283_v35, %v156_v37 }
 0x28d   :  { %v182_v36 = vpop.xlane.xlu0 %181 }
 0x28e   :  { %v185_v38 = vadd.f32 %v182_v36, %v163_v34 }
 0x290   :  { %188 = vst.msk [vmem:[#allocation3] sm:$0xff] %vm47_vm1, %v185_v38 }
 0x291   :  { %v184_v40 = vpop.xlane.xlu1 %183 }
 0x292   :  { %v186_v41 = vadd.f32 %v184_v40, %v164_v39 }
 0x294   :  { %189 = vst.msk [vmem:[#allocation3 + $0x8] sm:$0xff] %vm47_vm1, %v186_v41 }
 0x297   :  { %v203_v42 = vld [vmem:[#allocation3] sm:$0xff] }
 0x298   :  { %284 = vlog2.f32 %v203_v42 }
 0x29b   :  { %v204_v43 = vld [vmem:[#allocation3 + $0x8] sm:$0xff] }
 0x29c   :  { %286 = vlog2.f32 %v204_v43 }
 0x2a5   :  { %v285_v44 = vpop.eup %284 }
 0x2a6   :  { %v206_v45 = vmul.f32 0.6931472, %v285_v44 }
 0x2a8   :  { %v209_v47 = vadd.f32 %v206_v45, %v201_v46 }
 0x2a9   :  { %v287_v48 = vpop.eup %286 }
 0x2aa   :  { %215 = vperm.xlu0 %275, %v209_v47   ;;  %v208_v49 = vmul.f32 0.6931472, %v287_v48 }
 0x2ac   :  { %v210_v51 = vadd.f32 %v208_v49, %v202_v50 }
 0x2ae   :  { %220 = vperm.xlu1 %274, %v210_v51  }
 0x325   :  { %v216_v52 = vpop.permute.xlu0 %215 }
 0x326   :  { %v223_v53 = vsub.f32 %v401_v10, %v216_v52 }
 0x328   :  { %225 = vst [vmem:[#allocation9] sm:$0xff] %v223_v53 }
 0x329   :  { %v221_v54 = vpop.permute.xlu1 %220 }
 0x32a   :  { %v224_v55 = vsub.f32 %v404_v11, %v221_v54 }
 0x32c   :  { %226 = vst [vmem:[#allocation9 + $0x8] sm:$0xff] %v224_v55 }
 0x32d   :  { %339 = shalt.err (!%p336_p0)
}
 0x32e   :  { %238 = dma.vmem_to_hbm [thread:$0]  %s233_s24, 256, %s426_s3, [#allocation6], %s355_s15, %s355_s15, %s356_s16  }
 0x32f   :  { %352 = dma.done.wait [#allocation6], 256  }
 0x330   :  { %353 = vsyncadd [#allocation6], 4294967040 }
 0x331   :  { %242 = vsyncpa [#allocation5], 1 }
 0x332   :  { %243 = vsyncpa [#allocation8], 1 }
 0x333   :  { %244 = vsyncpa [#allocation6], 1 }

</bundles_post_ra>
